<compile_context>
chip_gen: v5e
topology: v5e:2x2
jax: 0.10.0
libtpu: 0.0.40
codegen_flags: <defaults>
</compile_context>

<pallas_src>
import jax
import jax.numpy as jnp
from jax.experimental import pallas as pl
from jax.experimental.pallas import tpu as pltpu


def outputblock_kernel(x_ref, w_ref, b_ref, o_ref):
    # x_ref: (1, C_in, ts)   w_ref: (C_out, C_in)   b_ref: (C_out, 1)
    # o_ref: (1, C_out, ts)
    acc = jnp.dot(w_ref[...], x_ref[0], preferred_element_type=jnp.float32)
    o_ref[0] = (acc + b_ref[...]).astype(o_ref.dtype)


def _pick_spatial_tile(S, C_in, C_out, target=2048, vmem_budget=8 << 20):
    """Spatial tile: multiple of 128 (or full S), sized to stay well inside VMEM."""
    if S <= target:
        return S                      # full extent is always a legal block dim
    ts = target - (target % 128)
    # double-buffered f32 input + output columns per spatial element
    bytes_per_col = (C_in + C_out) * 4 * 2
    while ts > 128 and ts * bytes_per_col > vmem_budget:
        ts //= 2
    ts -= ts % 128
    return max(ts, 128)


def output_block(x, weight, bias, *, ts_target=2048):
    """Pallas implementation of OutputBlock.forward (1x1x1 Conv3d + bias).

    x      : (N, C_in, D, H, W)        float32, NCDHW (PyTorch convention)
    weight : (C_out, C_in, 1, 1, 1)    Conv3d weight
    bias   : (C_out,)
    returns: (N, C_out, D, H, W)
    """
    N, C_in, D, H, W = x.shape
    C_out = weight.shape[0]
    assert weight.shape[1] == C_in

    S = D * H * W
    ts = _pick_spatial_tile(S, C_in, C_out, target=ts_target)
    grid_s = pl.cdiv(S, ts)

    x3 = x.reshape(N, C_in, S)          # free reshape (row-major contiguous)
    w2d = weight.reshape(C_out, C_in)
    b2d = bias.reshape(C_out, 1)

    out3 = pl.pallas_call(
        outputblock_kernel,
        out_shape=jax.ShapeDtypeStruct((N, C_out, S), x.dtype),
        grid_spec=pltpu.PrefetchScalarGridSpec(
            num_scalar_prefetch=0,
            grid=(N, grid_s),
            in_specs=[
                pl.BlockSpec((1, C_in, ts), lambda n, s: (n, 0, s)),
                pl.BlockSpec((C_out, C_in), lambda n, s: (0, 0)),
                pl.BlockSpec((C_out, 1), lambda n, s: (0, 0)),
            ],
            out_specs=pl.BlockSpec((1, C_out, ts), lambda n, s: (n, 0, s)),
        ),
        compiler_params=pltpu.CompilerParams(
            dimension_semantics=("parallel", "parallel")),
    )(x3, w2d, b2d)

    return out3.reshape(N, C_out, D, H, W)   # already channel-major: no transpose


def _reference(x, weight, bias):
    """Pure-JAX reference matching torch Conv3d(k=1, s=1) + bias."""
    y = jax.lax.conv_general_dilated(
        x, weight, window_strides=(1, 1, 1), padding="VALID",
        dimension_numbers=("NCDHW", "OIDHW", "NCDHW"))
    return y + bias.reshape(1, -1, 1, 1, 1)


if __name__ == "__main__":
    key = jax.random.PRNGKey(0)
    k_x, k_w, k_b = jax.random.split(key, 3)

    # Small shapes consistent with the module: batch=2, C_in=16 -> C_out=8,
    # spatial 16^3.  S = 4096, tile = 2048 -> grid (2, 2) = 4 parallel steps.
    N, C_in, C_out = 2, 16, 8
    D = H = W = 16

    x = jax.random.normal(k_x, (N, C_in, D, H, W), dtype=jnp.float32)
    # Deterministic synthetic parameters (PyTorch Conv3d default init style).
    fan_in = C_in * 1 * 1 * 1
    bound = 1.0 / (fan_in ** 0.5)
    weight = jax.random.uniform(k_w, (C_out, C_in, 1, 1, 1),
                                minval=-bound, maxval=bound, dtype=jnp.float32)
    bias = jax.random.uniform(k_b, (C_out,), minval=-bound, maxval=bound,
                              dtype=jnp.float32)

    out = output_block(x, weight, bias)
    jax.block_until_ready(out)

    ref = _reference(x, weight, bias)
    assert out.shape == (N, C_out, D, H, W)
    assert jnp.allclose(out, ref, atol=1e-5, rtol=1e-5), "mismatch vs reference"

    print("KERNEL_OK")
</pallas_src>

<mosaic_0001>
module attributes {stable_mosaic.version = 11 : i64} {
  func.func @outputblock_kernel(%arg0: i32, %arg1: i32, %arg2: memref<1x16x2048xf32, #tpu.memory_space<vmem>>, %arg3: memref<8x16xf32, #tpu.memory_space<vmem>>, %arg4: memref<8x1xf32, #tpu.memory_space<vmem>>, %arg5: memref<1x8x2048xf32, #tpu.memory_space<vmem>>) attributes {dimension_semantics = [#tpu.dimension_semantics<parallel>, #tpu.dimension_semantics<parallel>], iteration_bounds = array<i64: 2, 2>, scalar_prefetch = 0 : i64, scratch_operands = 0 : i64, tpu.core_type = #tpu.core_type<tc>, window_params = [{transform_indices = @transform_0, window_bounds = array<i64: 1, 16, 2048>}, {pipeline_mode = #tpu.pipeline_mode<synchronous>, transform_indices = @transform_1, window_bounds = array<i64: 8, 16>}, {pipeline_mode = #tpu.pipeline_mode<synchronous>, transform_indices = @transform_2, window_bounds = array<i64: 8, 1>}, {transform_indices = @transform_3, window_bounds = array<i64: 1, 8, 2048>}]} {
    %c0 = arith.constant 0 : index
    %c0_0 = arith.constant 0 : index
    %0 = vector.load %arg3[%c0, %c0_0] : memref<8x16xf32, #tpu.memory_space<vmem>>, vector<8x16xf32>
    %c0_1 = arith.constant 0 : index
    %c0_2 = arith.constant 0 : index
    %c0_3 = arith.constant 0 : index
    %1 = vector.load %arg2[%c0_1, %c0_2, %c0_3] : memref<1x16x2048xf32, #tpu.memory_space<vmem>>, vector<1x16x2048xf32>
    %2 = vector.shape_cast %1 : vector<1x16x2048xf32> to vector<16x2048xf32>
    %cst = arith.constant dense<0.000000e+00> : vector<8x2048xf32>
    %3 = tpu.matmul %0, %2, %cst {dimension_numbers = #tpu.dot_dimension_numbers<[1], [0], [0], [1], [0, 0, 1, 1], [], []>} : vector<8x16xf32>, vector<16x2048xf32>, vector<8x2048xf32> -> vector<8x2048xf32>
    %c0_4 = arith.constant 0 : index
    %c0_5 = arith.constant 0 : index
    %4 = vector.load %arg4[%c0_4, %c0_5] : memref<8x1xf32, #tpu.memory_space<vmem>>, vector<8x1xf32>
    %5 = vector.broadcast %4 : vector<8x1xf32> to vector<8x2048xf32>
    %6 = arith.addf %3, %5 : vector<8x2048xf32>
    %c0_6 = arith.constant 0 : index
    %c0_7 = arith.constant 0 : index
    %c0_8 = arith.constant 0 : index
    %7 = vector.load %arg5[%c0_6, %c0_7, %c0_8] : memref<1x8x2048xf32, #tpu.memory_space<vmem>>, vector<1x8x2048xf32>
    %8 = vector.shape_cast %7 : vector<1x8x2048xf32> to vector<8x2048xf32>
    %9 = vector.shape_cast %6 : vector<8x2048xf32> to vector<1x8x2048xf32>
    tpu.vector_store %arg5[%c0_6, %c0_7, %c0_8], %9 {strides = array<i32>} : memref<1x8x2048xf32, #tpu.memory_space<vmem>>, vector<1x8x2048xf32>,
    return
  }
  func.func @transform_0(%arg0: i32, %arg1: i32) -> (i32, i32, i32) {
    %c0_i32 = arith.constant 0 : i32
    %c0_i32_0 = arith.constant 0 : i32
    return %arg0, %c0_i32, %arg1 : i32, i32, i32
  }
  func.func @transform_1(%arg0: i32, %arg1: i32) -> (i32, i32) {
    %c0_i32 = arith.constant 0 : i32
    %c0_i32_0 = arith.constant 0 : i32
    %c0_i32_1 = arith.constant 0 : i32
    return %c0_i32, %c0_i32_0 : i32, i32
  }
  func.func @transform_2(%arg0: i32, %arg1: i32) -> (i32, i32) {
    %c0_i32 = arith.constant 0 : i32
    %c0_i32_0 = arith.constant 0 : i32
    %c0_i32_1 = arith.constant 0 : i32
    return %c0_i32, %c0_i32_0 : i32, i32
  }
  func.func @transform_3(%arg0: i32, %arg1: i32) -> (i32, i32, i32) {
    %c0_i32 = arith.constant 0 : i32
    %c0_i32_0 = arith.constant 0 : i32
    return %arg0, %c0_i32, %arg1 : i32, i32, i32
  }
}

</mosaic_0001>

<bundles_post_ra>
// kernel: tpu_custom_call.1
= control target key start
LH: loop header
LB: loop body
LE: loop exit
PB: predicated region body
PF: predicated region fallthrough
CT: control target
= control target key end

     0   :  { %8 = vsyncpa [#allocation3], 0  ;;  %s1202_s0 = inlined_call_operand.hbm [shape: f32[2,16,4096], index: 0, kind: input, shape index: {}]   ;;  %s1203_s1 = inlined_call_operand.vmem [shape: f32[8,16], index: 1, kind: input, shape index: {}]   ;;  %s1204_s2 = inlined_call_operand.vmem [shape: f32[8,1], index: 2, kind: input, shape index: {}]   ;;  %s1205_s3 = inlined_call_operand.hbm [shape: f32[2,8,4096], index: 3, kind: output, shape index: {}]  }
   0x1   :  { %10 = vsyncpa [#allocation3 + $0x1], 0 }
   0x2   :  { %11 = vsyncpa [#allocation4], 0 }
   0x3   :  { %13 = vsyncpa [#allocation4 + $0x1], 0  ;;  %s966_s12 = smov 0   ;;  %s968_s13 = smov 0  }
   0x4   :  { %s970_s14 = smov 0   ;;  %s972_s15 = smov 0  }
   0x5   :  { %s974_s16 = smov 0   ;;  %s976_s17 = smov 0  }
   0x6   :  { %s978_s18 = smov 0   ;;  %s980_s19 = smov 0  }
   0x7 LB: > { %1209 = sst [smem:[#allocation8_spill]] %s932_s17  ;;  %s696_s20 = sadd.s32 4294967295, %s940_s19   ;;  %s940_s19 = sphi %s980_s19, %s19_s19   ;;  %s936_s18 = sphi %s978_s18, %s1225_s18   ;;  %s932_s17 = sphi %s976_s17, %s1219_s17   ;;  %s928_s16 = sphi %s974_s16, %s1224_s16   ;;  %s924_s15 = sphi %s972_s15, %s1218_s15   ;;  %s920_s14 = sphi %s970_s14, %s1223_s14   ;;  %s916_s13 = sphi %s968_s13, %s1222_s13   ;;  %s912_s12 = sphi %s966_s12, %s1221_s12  }
   0x8   : > { %s697_s21 = sadd.s32 4294967294, %s940_s19   ;;  %s28_s22 = sadd.s32 1, %s932_s17 }
   0x9   : > { %s31_s23 = sadd.s32 1, %s936_s18  ;;  %p29_p0 = scmp.ge.s32.totalorder %s28_s22, 2 }
   0xa   : > { %s40_s24 = sadd.s32 1, %s920_s14  ;;  %p47_p1 = scmp.ne.s32.totalorder %s920_s14, %s916_s13 }
   0xb   : > { %p48_p2 = scmp.eq.s32.totalorder %s940_s19, 0  ;;  %s1227_s22 = smov (%p29_p0, %s28_s22), 0 }
   0xc   : > { %1210 = sst [smem:[#allocation9_spill]] %s1227_s22  ;;  %s1229_s23 = smov (!%p29_p0, %s31_s23), %s936_s18 }
   0xd   : > { %s36_s25 = ssub.s32 %s932_s17, %s1227_s22  ;;  %p1019_p3 = por %p48_p2, %p47_p1 }
   0xe   : > { %p33_p4 = scmp.ge.s32.totalorder %s1229_s23, 2  ;;  %p53_p5 = scmp.ne.s32.totalorder %s916_s13, %s912_s12 }
   0xf   : > { %p54_p6 = scmp.eq.s32.totalorder %s696_s20, 0  ;;  %p121_p7 = scmp.eq.s32.totalorder %s696_s20, 3 }
  0x10   : > { %s1231_s23 = smov (%p33_p4, %s1229_s23), 0  ;;  %p127_p10 = scmp.eq.s32.totalorder %s697_s21, 3 }
  0x11   : > { %1212 = sst [smem:[#allocation10_spill]] %s1231_s23  ;;  %p1027_p8 = por %p54_p6, %p53_p5 }
  0x12   : > { %p1031_p9 = por %p121_p7, %p47_p1  ;;  %s35_s29 = ssub.s32 %s936_s18, %s1231_s23 }
  0x13   : > { %s37_s30 = sor.u32 %s36_s25, %s35_s29  ;;  %p1037_p12 = por %p127_p10, %p53_p5 }
  0x14   : > { %p38_p11 = scmp.eq.s32.totalorder %s37_s30, 0  ;;  %p741_p13 = scmp.lt.s32.totalorder %s940_s19, 4 }
  0x15   : > { %s153_s5 = sand.u32 1, %s920_s14   ;;  %s701_s8 = sshll.u32 %s932_s17, 4 }
  0x16   : > { %s1044_s6 = scalar_select %p38_p11, %s920_s14, %s40_s24  }
  0x17   : > { %s700_s7 = sshll.u32 %s153_s5, 8  ;;  %s702_s9 = sshll.u32 %s936_s18, 6 }
  0x18   : > { %1216 = sst [smem:[#allocation11_spill]] %s1044_s6  ;;  %s157_s10 = scalar_lea.vmem [#allocation2], %s700_s7 }
  0x19   : > { %s167_s11 = sshll.u32 %s157_s10, 4  ;;  %s162_s20 = sadd.s32 %s702_s9, %s701_s8  ;;  %s168_s11 = int_to_ptr.vmem [resolvable:$true] %s167_s11 }
  0x1a   : > { %s703_s21 = sshll.u32 %s162_s20, 3  ;;  %p734_p0 = pnand %p741_p13, %p1019_p3 }
  0x1b   : > { %s164_s30 = scalar_lea.hbm %s1202_s0, %s703_s21  ;;  %p704_p1 = scmp.ge.s32.totalorder %s940_s19, 1 }
  0x1c   : > { %s165_s23 = sshll.u32 %s164_s30, 4  ;;  %s154_s24 = scalar_lea.sflag [#allocation3], %s153_s5  ;;  %s166_s23 = int_to_ptr.hbm [resolvable:$true] %s165_s23 }
  0x1d   : > { %s942_s22 = smov 4096   ;;  %s943_s6 = smov 2048  }
  0x1e   : > { %s944_s17 = smov 128   ;;  %p175_p2 = scmp.lt.s32.totalorder %s940_s19, 5 }
  0x1f   : > { %736 = dma.hbm_to_vmem [thread:$0]  (!%p734_p0), %s166_s23, 4096, %s168_s11, %s154_s24, %s942_s22, %s943_s6, %s944_s17  }
  0x20   : > { %p176_p4 = pnand %p704_p1, %p175_p2 }
  0x21   : > { %s1056_s7 = sand.u32 (!%p176_p4), 1, %s916_s13  }
  0x22   : > { %179 = sbr.rel (%p176_p4) target bundleno = 207 (0xcf), region = 32  ;;  %s705_s26 = sshll.u32 (!%p176_p4), %s1056_s7, 8 }
  0x23   : > { %s182_s8 = scalar_lea.sflag (!%p176_p4), [#allocation3], %s1056_s7  ;;  %s1060_s9 = scalar_lea.vmem (!%p176_p4), [#allocation2], %s705_s26 }
  0x27   : > { %903 = dma.done.wait (%p1027_p8), %s182_s8, 4096  }
  0x28   : > { %905 = vsyncadd (%p1027_p8), %s182_s8, 4294963200  ;;  %v945_v0 = vmov 0   ;;  %v230_v1 = vld [vmem:[%s1060_s9 + $0x90] sm:$0xff]  ;;  %v231_v2 = vld [vmem:[%s1060_s9 + $0x98] sm:$0xff]  ;;  %vm250_vm0 = vcmask 130048   ;;  %s706_s5 = sshll.u32 %s1056_s7, 7 }
  0x29   : > { %811 = vset.pattern.permute.xlu0 %v945_v0  ;;  %v214_v3 = vld [vmem:[%s1060_s9 + $0x10] sm:$0xff]  ;;  %308 = vmatpush.msra.mxu2 %v230_v1  ;;  %v215_v4 = vld [vmem:[%s1060_s9 + $0x18] sm:$0xff]  ;;  %v1073_v5 = vld [vmem:[%s1203_s1] sm:$0xff]  ;;  %s1139_s6 = scalar_lea.vmem [#allocation5], %s706_s5  ;;  %s724_s10 = sshll.u32 %s924_s15, 4 }
  0x2a   : > { %328 = vmatpush.msra.mxu3 %v231_v2  ;;  %v234_v6 = vld [vmem:[%s1060_s9 + $0xb0] sm:$0xff]  ;;  %v235_v7 = vld [vmem:[%s1060_s9 + $0xb8] sm:$0xff]  ;;  %v228_v8 = vld [vmem:[%s1060_s9 + $0x80] sm:$0xff]  ;;  %s725_s11 = sshll.u32 %s928_s16, 5  ;;  %s606_s29 = sshll.u32 %s1139_s6, 4  ;;  %s607_s29 = int_to_ptr.vmem [resolvable:$true] %s606_s29 }
  0x2b   : > { %309 = vmatpush.msra.mxu2 %v214_v3  ;;  %v229_v9 = vld [vmem:[%s1060_s9 + $0x88] sm:$0xff]  ;;  %v218_v10 = vld [vmem:[%s1060_s9 + $0x30] sm:$0xff]  ;;  %v219_v11 = vld [vmem:[%s1060_s9 + $0x38] sm:$0xff]  ;;  %268 = vmatpush.msra.mxu0 %v228_v8  ;;  %s602_s20 = sadd.s32 %s725_s11, %s724_s10  ;;  %s591_s24 = scalar_lea.sflag [#allocation4], %s1056_s7 }
  0x2c   : > { %329 = vmatpush.msra.mxu3 %v215_v4  ;;  %709 = vmatmul.msk.f32.vlgmr.msra.gmra.mxu2 %vm250_vm0, %v1073_v5  ;;  %v212_v12 = vld [vmem:[%s1060_s9] sm:$0xff]  ;;  %v213_v13 = vld [vmem:[%s1060_s9 + $0x8] sm:$0xff]  ;;  %v238_v16 = vld [vmem:[%s1060_s9 + $0xd0] sm:$0xff]  ;;  %s726_s21 = sshll.u32 %s602_s20, 3  ;;  %s862_s22 = scalar_lea.hbm %s1205_s3, 512 }
  0x2d   : > { %710 = vmatmul.msk.f32.vlgmr.msra.gmra.mxu3 %vm250_vm0, %v1073_v5  ;;  %388 = vmatpush.msrb.mxu2 %v234_v6  ;;  %v232_v14 = vld [vmem:[%s1060_s9 + $0xa0] sm:$0xff]  ;;  %v233_v15 = vld [vmem:[%s1060_s9 + $0xa8] sm:$0xff]  ;;  %v239_v17 = vld [vmem:[%s1060_s9 + $0xd8] sm:$0xff]  ;;  %s604_s25 = scalar_lea.hbm %s1205_s3, %s726_s21 }
  0x2e   : > { %408 = vmatpush.msrb.mxu3 %v235_v7  ;;  %288 = vmatpush.msra.mxu1 %v229_v9  ;;  %v216_v18 = vld [vmem:[%s1060_s9 + $0x20] sm:$0xff]  ;;  %v217_v19 = vld [vmem:[%s1060_s9 + $0x28] sm:$0xff]  ;;  %v222_v20 = vld [vmem:[%s1060_s9 + $0x50] sm:$0xff]  ;;  %s608_s30 = sshll.u32 %s604_s25, 4  ;;  %s609_s30 = int_to_ptr.hbm [resolvable:$true] %s608_s30 }
  0x2f   : > { %389 = vmatpush.msrb.mxu2 %v218_v10  ;;  %269 = vmatpush.msra.mxu0 %v212_v12  ;;  %v223_v21 = vld [vmem:[%s1060_s9 + $0x58] sm:$0xff]  ;;  %v236_v22 = vld [vmem:[%s1060_s9 + $0xc0] sm:$0xff]  ;;  %v237_v23 = vld [vmem:[%s1060_s9 + $0xc8] sm:$0xff]  ;;  %s856_s26 = sshra.s32 %s609_s30, 4  ;;  %s857_s26 = int_to_ptr.hbm [resolvable:$true] %s856_s26 }
  0x30   : > { %409 = vmatpush.msrb.mxu3 %v219_v11  ;;  %289 = vmatpush.msra.mxu1 %v213_v13  ;;  %v242_v24 = vld [vmem:[%s1060_s9 + $0xf0] sm:$0xff]  ;;  %v243_v25 = vld [vmem:[%s1060_s9 + $0xf8] sm:$0xff]  ;;  %v244_v26 = vld [vmem:[%s1204_s2] sm:$0xff]  ;;  %s858_s8 = scalar_lea.hbm %s857_s26, 128  ;;  %p863_p7 = scmp.lt.s32.totalorder %s857_s26, %s1205_s3 }
  0x31   : > { %707 = vmatmul.msk.f32.vlgmr.msra.gmra.mxu0 %vm250_vm0, %v1073_v5  ;;  %708 = vmatmul.msk.f32.vlgmr.msra.gmra.mxu1 %vm250_vm0, %v1073_v5  ;;  %v220_v27 = vld [vmem:[%s1060_s9 + $0x40] sm:$0xff]  ;;  %v221_v28 = vld [vmem:[%s1060_s9 + $0x48] sm:$0xff]  ;;  %v226_v29 = vld [vmem:[%s1060_s9 + $0x70] sm:$0xff]  ;;  %p859_p3 = scmp.ne.s32.totalorder %s857_s26, %s858_s8  ;;  %p864_p8 = scmp.lt.s32.totalorder %s862_s22, %s858_s8 }
  0x32   : > { %348 = vmatpush.msrb.mxu0 %v232_v14  ;;  %368 = vmatpush.msrb.mxu1 %v233_v15  ;;  %v227_v30 = vld [vmem:[%s1060_s9 + $0x78] sm:$0xff]  ;;  %v240_v31 = vld [vmem:[%s1060_s9 + $0xe0] sm:$0xff]  ;;  %v241_v32 = vld [vmem:[%s1060_s9 + $0xe8] sm:$0xff] }
  0x33   : > { %468 = vmatpush.msra.mxu2 %v238_v16  ;;  %488 = vmatpush.msra.mxu3 %v239_v17  ;;  %v224_v33 = vld [vmem:[%s1060_s9 + $0x60] sm:$0xff]  ;;  %v225_v34 = vld [vmem:[%s1060_s9 + $0x68] sm:$0xff]  ;;  %p860_p5 = pnand %p859_p3, %p1031_p9  ;;  %p865_p10 = por %p864_p8, %p863_p7 }
  0x34   : > { %713 = vmatmul.msk.f32.vlgmr.msrb.gmra.mxu2 %vm250_vm0, %v1073_v5  ;;  %349 = vmatpush.msrb.mxu0 %v216_v18 }
  0x35   : > { %714 = vmatmul.msk.f32.vlgmr.msrb.gmra.mxu3 %vm250_vm0, %v1073_v5  ;;  %369 = vmatpush.msrb.mxu1 %v217_v19  ;;  %p861_p6 = pneg %p860_p5 }
  0x36   : > { %469 = vmatpush.msra.mxu2 %v222_v20  ;;  %489 = vmatpush.msra.mxu3 %v223_v21 }
  0x37   : > { %428 = vmatpush.msra.mxu0 %v236_v22  ;;  %448 = vmatpush.msra.mxu1 %v237_v23  ;;  %p866_p11 = pnand %p865_p10, %p861_p6 }
  0x38   : > { %548 = vmatpush.msrb.mxu2 %v242_v24  ;;  %568 = vmatpush.msrb.mxu3 %v243_v25 }
  0x39   : > { %711 = vmatmul.msk.f32.vlgmr.msrb.gmra.mxu0 %vm250_vm0, %v1073_v5  ;;  %712 = vmatmul.msk.f32.vlgmr.msrb.gmra.mxu1 %vm250_vm0, %v1073_v5 }
  0x3a   : > { %247 = vperm.xlu0 %811, %v244_v26   ;;  %429 = vmatpush.msra.mxu0 %v220_v27 }
  0x3b   : > { %449 = vmatpush.msra.mxu1 %v221_v28  ;;  %549 = vmatpush.msrb.mxu2 %v226_v29 }
  0x3c   : > { %717 = vmatmul.msk.f32.vlgmr.msra.gmra.mxu2 %vm250_vm0, %v1073_v5  ;;  %569 = vmatpush.msrb.mxu3 %v227_v30 }
  0x3d   : > { %718 = vmatmul.msk.f32.vlgmr.msra.gmra.mxu3 %vm250_vm0, %v1073_v5  ;;  %508 = vmatpush.msrb.mxu0 %v240_v31 }
  0x3e   : > { %528 = vmatpush.msrb.mxu1 %v241_v32 }
  0x3f   : > { %509 = vmatpush.msrb.mxu0 %v224_v33 }
  0x40   : > { %529 = vmatpush.msrb.mxu1 %v225_v34 }
  0x41   : > { %715 = vmatmul.msk.f32.vlgmr.msra.gmra.mxu0 %vm250_vm0, %v1073_v5  ;;  %716 = vmatmul.msk.f32.vlgmr.msra.gmra.mxu1 %vm250_vm0, %v1073_v5 }
  0x44   : > { %721 = vmatmul.msk.f32.vlgmr.msrb.gmra.mxu2 %vm250_vm0, %v1073_v5 }
  0x45   : > { %722 = vmatmul.msk.f32.vlgmr.msrb.gmra.mxu3 %vm250_vm0, %v1073_v5 }
  0x49   : > { %719 = vmatmul.msk.f32.vlgmr.msrb.gmra.mxu0 %vm250_vm0, %v1073_v5  ;;  %720 = vmatmul.msk.f32.vlgmr.msrb.gmra.mxu1 %vm250_vm0, %v1073_v5 }
  0xac   : > { %v248_v35 = vpop.permute.xlu0 %247 }
  0xae   : > { %v271_v36 = vpop.f32.mrf.mxu0  ;;  %v291_v37 = vpop.f32.mrf.mxu1 }
  0xaf   : > { %v272_v38 = vadd.f32 %v271_v36, %v248_v35  ;;  %v292_v39 = vadd.f32 %v291_v37, %v248_v35  ;;  %v311_v40 = vpop.f32.mrf.mxu2 }
  0xb0   : > { %v331_v41 = vpop.f32.mrf.mxu3  ;;  %v312_v42 = vadd.f32 %v311_v40, %v248_v35 }
  0xb1   : > { %v332_v43 = vadd.f32 %v331_v41, %v248_v35  ;;  %574 = vst [vmem:[%s1139_s6] sm:$0xff] %v272_v38 }
  0xb2   : > { %575 = vst [vmem:[%s1139_s6 + $0x8] sm:$0xff] %v292_v39 }
  0xb3   : > { %576 = vst [vmem:[%s1139_s6 + $0x10] sm:$0xff] %v312_v42 }
  0xb4   : > { %577 = vst [vmem:[%s1139_s6 + $0x18] sm:$0xff] %v332_v43 }
  0xb6   : > { %v351_v44 = vpop.f32.mrf.mxu0  ;;  %v371_v45 = vpop.f32.mrf.mxu1 }
  0xb7   : > { %v352_v46 = vadd.f32 %v351_v44, %v248_v35  ;;  %v372_v47 = vadd.f32 %v371_v45, %v248_v35  ;;  %v391_v48 = vpop.f32.mrf.mxu2 }
  0xb8   : > { %v411_v49 = vpop.f32.mrf.mxu3  ;;  %v392_v50 = vadd.f32 %v391_v48, %v248_v35 }
  0xb9   : > { %v412_v51 = vadd.f32 %v411_v49, %v248_v35  ;;  %578 = vst [vmem:[%s1139_s6 + $0x20] sm:$0xff] %v352_v46 }
  0xba   : > { %579 = vst [vmem:[%s1139_s6 + $0x28] sm:$0xff] %v372_v47 }
  0xbb   : > { %580 = vst [vmem:[%s1139_s6 + $0x30] sm:$0xff] %v392_v50 }
  0xbc   : > { %581 = vst [vmem:[%s1139_s6 + $0x38] sm:$0xff] %v412_v51 }
  0xbe   : > { %v431_v52 = vpop.f32.mrf.mxu0  ;;  %v451_v53 = vpop.f32.mrf.mxu1 }
  0xbf   : > { %v432_v54 = vadd.f32 %v431_v52, %v248_v35  ;;  %v452_v55 = vadd.f32 %v451_v53, %v248_v35  ;;  %v471_v56 = vpop.f32.mrf.mxu2 }
  0xc0   : > { %v491_v57 = vpop.f32.mrf.mxu3  ;;  %v472_v58 = vadd.f32 %v471_v56, %v248_v35 }
  0xc1   : > { %v492_v59 = vadd.f32 %v491_v57, %v248_v35  ;;  %582 = vst [vmem:[%s1139_s6 + $0x40] sm:$0xff] %v432_v54 }
  0xc2   : > { %583 = vst [vmem:[%s1139_s6 + $0x48] sm:$0xff] %v452_v55 }
  0xc3   : > { %584 = vst [vmem:[%s1139_s6 + $0x50] sm:$0xff] %v472_v58 }
  0xc4   : > { %585 = vst [vmem:[%s1139_s6 + $0x58] sm:$0xff] %v492_v59 }
  0xc6   : > { %v511_v60 = vpop.f32.mrf.mxu0  ;;  %v531_v61 = vpop.f32.mrf.mxu1 }
  0xc7   : > { %v512_v62 = vadd.f32 %v511_v60, %v248_v35  ;;  %v532_v63 = vadd.f32 %v531_v61, %v248_v35  ;;  %v551_v0 = vpop.f32.mrf.mxu2 }
  0xc8   : > { %v571_v1 = vpop.f32.mrf.mxu3  ;;  %v552_v2 = vadd.f32 %v551_v0, %v248_v35 }
  0xc9   : > { %v572_v3 = vadd.f32 %v571_v1, %v248_v35  ;;  %586 = vst [vmem:[%s1139_s6 + $0x60] sm:$0xff] %v512_v62 }
  0xca   : > { %587 = vst [vmem:[%s1139_s6 + $0x68] sm:$0xff] %v532_v63 }
  0xcb   : > { %588 = vst [vmem:[%s1139_s6 + $0x70] sm:$0xff] %v552_v2 }
  0xcc   : > { %589 = vst [vmem:[%s1139_s6 + $0x78] sm:$0xff] %v572_v3 }
  0xcd   : > { %869 = shalt.err (!%p866_p11)
}
  0xce   : > { %731 = dma.vmem_to_hbm [thread:$0]  (%p1031_p9), %s607_s29, 2048, %s609_s30, %s591_s24  }
  0xcf PF: > { %p742_p13 = scmp.ge.s32.totalorder %s940_s19, 2  ;;  %s620_s7 = sand.u32 1, %s912_s12  }
  0xd0   : > { %s621_s5 = scalar_lea.sflag [#allocation4], %s620_s7 }
  0xd1   : > { %p738_p0 = pnand %p742_p13, %p1037_p12 }
  0xd3   : > { %p739_p1 = pneg %p738_p0 }
  0xd5   : > { %907 = dma.done.wait (%p739_p1), %s621_s5, 2048  }
  0xd6   : > { %909 = vsyncadd (%p739_p1), %s621_s5, 4294965248  ;;  %s19_s19 = sadd.s32 1, %s940_s19   ;;  %s1217_s6 = sld [smem:[#allocation11_spill]] }
  0xd7   : > { %p16_p2 = scmp.ge.s32.totalorder %s19_s19, 6   ;;  %s1218_s15 = sld [smem:[#allocation8_spill]] }
  0xd8   : > { %s1219_s17 = sld [smem:[#allocation9_spill]]  ;;  %s1221_s12 = smov %s916_s13 }
  0xd9   : > { %s1220_s28 = sld [smem:[#allocation10_spill]]  ;;  %s1222_s13 = smov %s920_s14 }
  0xda   : > { %s1224_s16 = smov %s936_s18 }
  0xdb   :  { %18 = sbr.rel (!%p16_p2) target bundleno = 7 (0x7), region = 77 }
  0xdc   : > { %s1223_s14 = smov %s1217_s6 }
  0xdf   : > { %s1225_s18 = smov %s1220_s28 }
  0xe0   :  { %627 = vsyncpa [#allocation3], 1 }
  0xe1   :  { %629 = vsyncpa [#allocation3 + $0x1], 1 }
  0xe2   :  { %630 = vsyncpa [#allocation4], 1 }
  0xe3   :  { %632 = vsyncpa [#allocation4 + $0x1], 1 }

</bundles_post_ra>
